<compile_context>
chip_gen: v7x
topology: tpu7x:2x2x1
jax: 0.10.0
libtpu: 0.0.40
codegen_flags: <defaults>
</compile_context>

<pallas_src>
import functools

import jax
import jax.numpy as jnp
from jax import lax
from jax.experimental import pallas as pl
from jax.experimental.pallas import tpu as pltpu

LN_EPS = 1e-5


def _round_up(x, m):
    return ((x + m - 1) // m) * m


@functools.lru_cache(maxsize=None)
def _vmem_limit():
    """~half of physical VMEM: 64 MiB on v5e/v6e (128 MiB), 32 MiB on v7x (64 MiB)."""
    try:
        info = pltpu.get_tpu_info()
        phys = int(getattr(info, "vmem_capacity_bytes", 128 * 1024 * 1024))
    except Exception:
        phys = 128 * 1024 * 1024
    return max(32 * 1024 * 1024, min(96 * 1024 * 1024, phys // 2))


# ----------------------------------------------------------------------------
# Kernel 1: fused LayerNorm (last dim) + Linear, row-tiled.
# Used for the antibody path with W_out (and inv_norm) folded in, so
# H = c_h * c_z (>= 128, lane-dense output stores).
# ----------------------------------------------------------------------------
def _ln_linear_kernel(x_ref, g_ref, b_ref, w_ref, wb_ref, o_ref):
    x = x_ref[...].astype(jnp.float32)                        # (TR, C)
    mu = jnp.mean(x, axis=-1, keepdims=True)
    xc = x - mu
    var = jnp.mean(xc * xc, axis=-1, keepdims=True)
    xn = xc * lax.rsqrt(var + LN_EPS)
    xn = xn * g_ref[...] + b_ref[...]                         # f32 LN math
    y = jnp.dot(xn.astype(w_ref.dtype), w_ref[...],
                preferred_element_type=jnp.float32) + wb_ref[...]
    o_ref[...] = y.astype(o_ref.dtype)


def ln_linear(x, gamma, beta, w, b, *, out_dtype=jnp.float32, row_tile=512):
    M, C = x.shape
    H = w.shape[1]
    tr = min(row_tile, _round_up(M, 8))
    # v7x megacore: prefer >= 2 "parallel" grid steps so both TensorCores work.
    if _round_up(M, tr) // tr < 2 and M > 8:
        tr = _round_up((M + 1) // 2, 8)
    mp_ = _round_up(M, tr)
    if mp_ != M:
        x = jnp.pad(x, ((0, mp_ - M), (0, 0)))
    out = pl.pallas_call(
        _ln_linear_kernel,
        out_shape=jax.ShapeDtypeStruct((mp_, H), out_dtype),
        grid=(mp_ // tr,),
        in_specs=[
            pl.BlockSpec((tr, C), lambda i: (i, 0)),
            pl.BlockSpec((1, C), lambda i: (0, 0)),
            pl.BlockSpec((1, C), lambda i: (0, 0)),
            pl.BlockSpec((C, H), lambda i: (0, 0)),
            pl.BlockSpec((1, H), lambda i: (0, 0)),
        ],
        out_specs=pl.BlockSpec((tr, H), lambda i: (i, 0)),
        compiler_params=pltpu.CompilerParams(
            dimension_semantics=("parallel",),
            vmem_limit_bytes=_vmem_limit()),
    )(x,
      gamma.reshape(1, C).astype(jnp.float32),
      beta.reshape(1, C).astype(jnp.float32),
      w,
      b.reshape(1, H).astype(jnp.float32))
    return out[:M] if mp_ != M else out


# ----------------------------------------------------------------------------
# Kernel 2: fused LayerNorm + Linear + sum over K for the antigen MSA.
# Grid (N, L2-tiles, K-tiles) with K innermost ("arbitrary").  Each step loads
# a (TK, TL2, c_m) block, LayerNorms it, sums the LN'd chunk over K (the linear
# commutes with the K-sum), does ONE (TL2, c_m) @ (c_m, c_h) matmul and
# accumulates in f32 VMEM scratch; written back at the last K block.
# The linear bias (K * b_ag) plus an analytic correction for zero-padded K rows
# (each passes LN as exactly `beta`) is added once at the end.
# ----------------------------------------------------------------------------
def _msa_ln_linear_ksum_kernel(m_ref, g_ref, b_ref, w_ref, wb_ref, o_ref,
                               acc_ref):
    kb = pl.program_id(2)

    x = m_ref[0].astype(jnp.float32)                          # (TK, TL2, C)
    mu = jnp.mean(x, axis=-1, keepdims=True)
    xc = x - mu
    var = jnp.mean(xc * xc, axis=-1, keepdims=True)
    xn = xc * lax.rsqrt(var + LN_EPS)
    xn = xn * g_ref[...] + b_ref[...]                         # (TK, TL2, C)
    xsum = jnp.sum(xn, axis=0)                                # K-chunk sum (TL2, C)
    y = jnp.dot(xsum.astype(w_ref.dtype), w_ref[...],
                preferred_element_type=jnp.float32)           # (TL2, c_h)

    @pl.when(kb == 0)
    def _():
        acc_ref[...] = jnp.zeros_like(acc_ref)

    acc_ref[...] += y

    @pl.when(kb == pl.num_programs(2) - 1)
    def _():
        o_ref[0] = (acc_ref[...] + wb_ref[...]).astype(o_ref.dtype)


def msa_ln_linear_ksum(m, gamma, beta, w, b, *, out_dtype=jnp.float32,
                       l2_tile=512, k_tile=8):
    N, K, L2, C = m.shape
    H = w.shape[1]

    tl2 = min(l2_tile, _round_up(L2, 8))
    # v7x: prefer >= 2 "parallel" grid steps (the K axis is "arbitrary").
    if N * (_round_up(L2, tl2) // tl2) < 2 and L2 > 8:
        tl2 = _round_up((L2 + 1) // 2, 8)
    l2p = _round_up(L2, tl2)

    tk = min(k_tile, K)
    kp = _round_up(K, tk)

    if l2p != L2 or kp != K:
        m = jnp.pad(m, ((0, 0), (0, kp - K), (0, l2p - L2), (0, 0)))

    # Bias: real rows contribute K * b; zero-padded K rows pass LN as exactly
    # `beta`, contributing (kp - K) * (beta @ W) -> subtract analytically.
    beta_f32 = beta.astype(jnp.float32)
    w_f32 = w.astype(jnp.float32)
    wb = (float(K) * b.astype(jnp.float32)
          - float(kp - K) * (beta_f32 @ w_f32)).reshape(1, H)

    out = pl.pallas_call(
        _msa_ln_linear_ksum_kernel,
        out_shape=jax.ShapeDtypeStruct((N, l2p, H), out_dtype),
        grid=(N, l2p // tl2, kp // tk),
        in_specs=[
            pl.BlockSpec((1, tk, tl2, C), lambda n, j, kb: (n, kb, j, 0)),
            pl.BlockSpec((1, C), lambda n, j, kb: (0, 0)),
            pl.BlockSpec((1, C), lambda n, j, kb: (0, 0)),
            pl.BlockSpec((C, H), lambda n, j, kb: (0, 0)),
            pl.BlockSpec((1, H), lambda n, j, kb: (0, 0)),
        ],
        out_specs=pl.BlockSpec((1, tl2, H), lambda n, j, kb: (n, j, 0)),
        scratch_shapes=[pltpu.VMEM((tl2, H), jnp.float32)],
        compiler_params=pltpu.CompilerParams(
            dimension_semantics=("parallel", "parallel", "arbitrary"),
            vmem_limit_bytes=_vmem_limit()),
    )(m,
      gamma.reshape(1, C).astype(jnp.float32),
      beta.reshape(1, C).astype(jnp.float32),
      w,
      wb)
    return out[:, :L2] if l2p != L2 else out


# ----------------------------------------------------------------------------
# Kernel 3: outer-product-mean contraction.
# Grid (N, L1/ti, L2/TL2), all "parallel".  Per step: ONE batched matmul
# (TL2, c_h) @ (c_h, ti*c_z) on the MXU, one hoisted bias add, then ti
# lane-slice stores (lane offsets at multiples of c_z).  inv_norm and b_out
# scaling were folded upstream, so no per-output multiply here.
# ----------------------------------------------------------------------------
def _opm_kernel(msum_ref, t_ref, bias_ref, o_ref, *, ti, c_z):
    msum = msum_ref[0]                                        # (TL2, c_h)
    t = t_ref[0]                                              # (c_h, ti*c_z)
    acc = jnp.dot(msum, t, preferred_element_type=jnp.float32)  # (TL2, ti*c_z)
    acc = acc + bias_ref[...]                                 # (1, ti*c_z) bcast
    for ii in range(ti):                                      # slice + store only
        o_ref[0, ii] = acc[:, ii * c_z:(ii + 1) * c_z].astype(o_ref.dtype)


def opm(t4, msum, b_out_scaled, *, out_dtype, i_tile=16, l2_tile=512):
    N, L1, c_h, c_z = t4.shape
    L2 = msum.shape[1]

    ti = min(i_tile, L1)
    if (ti * c_z) % 128 != 0 and ti < L1:
        # Keep t's last block dim either lane-dense (multiple of 128) or equal
        # to the full array dim (required by the (8,128) BlockSpec rule).
        ti = L1
    l1p = _round_up(L1, ti)

    tl2 = min(l2_tile, _round_up(L2, 8))
    # v7x: prefer >= 2 "parallel" grid steps so both TensorCores get work.
    if N * (l1p // ti) * (_round_up(L2, tl2) // tl2) < 2 and L2 > 8:
        tl2 = _round_up((L2 + 1) // 2, 8)
    l2p = _round_up(L2, tl2)

    if l1p != L1:
        t4 = jnp.pad(t4, ((0, 0), (0, l1p - L1), (0, 0), (0, 0)))
    if l2p != L2:
        msum = jnp.pad(msum, ((0, 0), (0, l2p - L2), (0, 0)))

    # Present t as (N, c_h, L1*c_z): column index i*c_z + z.  t is tiny
    # relative to z, so this wrapper transpose is cheap layout plumbing.
    t_lin = jnp.transpose(t4, (0, 2, 1, 3)).reshape(N, c_h, l1p * c_z)

    # Bias tiled to (1, ti*c_z) so the add is done once per grid step.
    bias = jnp.tile(b_out_scaled.astype(jnp.float32).reshape(1, c_z), (1, ti))

    kernel = functools.partial(_opm_kernel, ti=ti, c_z=c_z)
    out = pl.pallas_call(
        kernel,
        out_shape=jax.ShapeDtypeStruct((N, l1p, l2p, c_z), out_dtype),
        grid=(N, l1p // ti, l2p // tl2),
        in_specs=[
            pl.BlockSpec((1, tl2, c_h), lambda n, i, j: (n, j, 0)),
            pl.BlockSpec((1, c_h, ti * c_z), lambda n, i, j: (n, 0, i)),
            pl.BlockSpec((1, ti * c_z), lambda n, i, j: (0, 0)),
        ],
        out_specs=pl.BlockSpec((1, ti, tl2, c_z), lambda n, i, j: (n, i, j, 0)),
        compiler_params=pltpu.CompilerParams(
            dimension_semantics=("parallel", "parallel", "parallel"),
            vmem_limit_bytes=_vmem_limit()),
    )(msum, t_lin, bias)
    if l1p != L1 or l2p != L2:
        out = out[:, :L1, :L2]
    return out


# ----------------------------------------------------------------------------
# Full forward (glue reshapes / weight folding in plain JAX; all heavy compute
# in Pallas).
# ----------------------------------------------------------------------------
def outer_product_mean_sm(s, m, p, eps=1e-3, compute_dtype=jnp.bfloat16,
                          z_dtype=None):
    if z_dtype is None:
        z_dtype = compute_dtype
    N, L1, c_s = s.shape
    _, K, L2, c_m = m.shape
    c_h = p["w_ab"].shape[1]
    c_z = p["b_out"].shape[0]
    inv_norm = 1.0 / (float(K) + float(eps))

    # Fold W_out into the antibody linear (two back-to-back linears with no
    # nonlinearity between them collapse exactly).  W_out (c_h*c_h, c_z) viewed
    # as (c_h, c_h*c_z), column index e*c_z + z.  inv_norm rides the same fold.
    w2 = p["w_out"].reshape(c_h, c_h * c_z)
    w_ab2 = ((p["w_ab"] @ w2) * inv_norm).astype(compute_dtype)   # (c_s, c_h*c_z)
    b_ab2 = (p["b_ab"] @ w2) * inv_norm                           # (c_h*c_z,)
    b_out_s = p["b_out"].astype(jnp.float32) * inv_norm

    # Antibody path: t[n,i,e,z] = inv_norm * sum_c a[n,i,c] * W_out[c*c_h+e, z]
    t_flat = ln_linear(s.reshape(N * L1, c_s), p["g_ab"], p["bt_ab"],
                       w_ab2, b_ab2, out_dtype=compute_dtype)
    t4 = t_flat.reshape(N, L1, c_h, c_z)

    # Antigen path: msum[n,j,e] = sum_k (LN(m[n,k,j]) @ W_ag + b_ag)[e]
    msum = msa_ln_linear_ksum(m, p["g_ag"], p["bt_ag"],
                              p["w_ag"].astype(compute_dtype), p["b_ag"],
                              out_dtype=compute_dtype)            # (N, L2, c_h)

    # z[n,i,j,:] = msum[n,j] @ t4[n,i] + b_out * inv_norm
    return opm(t4, msum, b_out_s, out_dtype=z_dtype)


# ----------------------------------------------------------------------------
# Pure-JAX reference (mirrors the PyTorch forward) for verification.
# ----------------------------------------------------------------------------
def reference(s, m, p, eps=1e-3):
    def ln(x, g, b):
        mu = x.mean(-1, keepdims=True)
        var = ((x - mu) ** 2).mean(-1, keepdims=True)
        return (x - mu) / jnp.sqrt(var + LN_EPS) * g + b

    a = ln(s, p["g_ab"], p["bt_ab"]) @ p["w_ab"] + p["b_ab"]       # (N,L1,ch)
    mm = ln(m, p["g_ag"], p["bt_ag"]) @ p["w_ag"] + p["b_ag"]      # (N,K,L2,ch)
    msum = mm.sum(axis=1)                                          # (N,L2,ch)
    outer = jnp.einsum("nic,nje->nijce", a, msum)
    outer = outer.reshape(outer.shape[:3] + (-1,))
    z = outer @ p["w_out"] + p["b_out"]
    K = m.shape[1]
    return z / (K + eps)


if __name__ == "__main__":
    N, L1, L2, K = 2, 8, 8, 4
    c_s, c_m, c_z, c_h = 16, 16, 8, 32

    key = jax.random.PRNGKey(0)
    ks = jax.random.split(key, 12)
    params = {
        "g_ab": 1.0 + 0.1 * jax.random.normal(ks[0], (c_s,), jnp.float32),
        "bt_ab": 0.1 * jax.random.normal(ks[1], (c_s,), jnp.float32),
        "g_ag": 1.0 + 0.1 * jax.random.normal(ks[2], (c_m,), jnp.float32),
        "bt_ag": 0.1 * jax.random.normal(ks[3], (c_m,), jnp.float32),
        "w_ab": 0.1 * jax.random.normal(ks[4], (c_s, c_h), jnp.float32),
        "b_ab": 0.1 * jax.random.normal(ks[5], (c_h,), jnp.float32),
        "w_ag": 0.1 * jax.random.normal(ks[6], (c_m, c_h), jnp.float32),
        "b_ag": 0.1 * jax.random.normal(ks[7], (c_h,), jnp.float32),
        "w_out": 0.1 * jax.random.normal(ks[8], (c_h * c_h, c_z), jnp.float32),
        "b_out": 0.1 * jax.random.normal(ks[9], (c_z,), jnp.float32),
    }
    s = jax.random.normal(ks[10], (N, L1, c_s), jnp.float32)
    m = jax.random.normal(ks[11], (N, K, L2, c_m), jnp.float32)

    z_ref = reference(s, m, params)

    # Exact path (f32 matmul operands, f32 z): tight tolerance.
    z_f32 = outer_product_mean_sm(s, m, params, compute_dtype=jnp.float32)
    z_f32 = jax.block_until_ready(z_f32)
    assert z_f32.shape == (N, L1, L2, c_z)
    assert z_f32.dtype == jnp.float32
    if not bool(jnp.allclose(z_f32, z_ref, atol=1e-4, rtol=1e-4)):
        raise AssertionError("Pallas f32 output does not match reference")

    # Performance path (bf16 intermediates, bf16 z, f32 accumulate): loose
    # tolerance appropriate for bf16.
    z_bf16 = outer_product_mean_sm(s, m, params, compute_dtype=jnp.bfloat16)
    z_bf16 = jax.block_until_ready(z_bf16)
    assert z_bf16.shape == (N, L1, L2, c_z)
    assert z_bf16.dtype == jnp.bfloat16
    if not bool(jnp.allclose(z_bf16.astype(jnp.float32), z_ref,
                             atol=5e-2, rtol=5e-2)):
        raise AssertionError("Pallas bf16 output does not match reference")

    print("KERNEL_OK")
</pallas_src>

<mosaic_0001>
module attributes {stable_mosaic.version = 11 : i64} {
  func.func @_ln_linear_kernel(%arg0: i32, %arg1: memref<8x16xf32, #tpu.memory_space<vmem>>, %arg2: memref<1x16xf32, #tpu.memory_space<vmem>>, %arg3: memref<1x16xf32, #tpu.memory_space<vmem>>, %arg4: memref<16x256xf32, #tpu.memory_space<vmem>>, %arg5: memref<1x256xf32, #tpu.memory_space<vmem>>, %arg6: memref<8x256xf32, #tpu.memory_space<vmem>>) attributes {dimension_semantics = [#tpu.dimension_semantics<parallel>], iteration_bounds = array<i64: 2>, scalar_prefetch = 0 : i64, scratch_operands = 0 : i64, tpu.core_type = #tpu.core_type<tc>, window_params = [{transform_indices = @transform_0, window_bounds = array<i64: 8, 16>}, {pipeline_mode = #tpu.pipeline_mode<synchronous>, transform_indices = @transform_1, window_bounds = array<i64: 1, 16>}, {pipeline_mode = #tpu.pipeline_mode<synchronous>, transform_indices = @transform_2, window_bounds = array<i64: 1, 16>}, {pipeline_mode = #tpu.pipeline_mode<synchronous>, transform_indices = @transform_3, window_bounds = array<i64: 16, 256>}, {pipeline_mode = #tpu.pipeline_mode<synchronous>, transform_indices = @transform_4, window_bounds = array<i64: 1, 256>}, {transform_indices = @transform_5, window_bounds = array<i64: 8, 256>}]} {
    %c0 = arith.constant 0 : index
    %c0_0 = arith.constant 0 : index
    %0 = vector.load %arg1[%c0, %c0_0] : memref<8x16xf32, #tpu.memory_space<vmem>>, vector<8x16xf32>
    %cst = arith.constant dense<0.000000e+00> : vector<8xf32>
    %1 = vector.multi_reduction <add>, %0, %cst [1] : vector<8x16xf32> to vector<8xf32>
    %2 = vector.shape_cast %1 : vector<8xf32> to vector<8x1xf32>
    %cst_1 = arith.constant 1.600000e+01 : f32
    %3 = vector.broadcast %cst_1 : f32 to vector<8x1xf32>
    %4 = arith.divf %2, %3 : vector<8x1xf32>
    %5 = vector.broadcast %4 : vector<8x1xf32> to vector<8x16xf32>
    %6 = arith.subf %0, %5 : vector<8x16xf32>
    %7 = arith.mulf %6, %6 : vector<8x16xf32>
    %cst_2 = arith.constant dense<0.000000e+00> : vector<8xf32>
    %8 = vector.multi_reduction <add>, %7, %cst_2 [1] : vector<8x16xf32> to vector<8xf32>
    %9 = vector.shape_cast %8 : vector<8xf32> to vector<8x1xf32>
    %cst_3 = arith.constant 1.600000e+01 : f32
    %10 = vector.broadcast %cst_3 : f32 to vector<8x1xf32>
    %11 = arith.divf %9, %10 : vector<8x1xf32>
    %cst_4 = arith.constant 9.99999974E-6 : f32
    %12 = vector.broadcast %cst_4 : f32 to vector<8x1xf32>
    %13 = arith.addf %11, %12 : vector<8x1xf32>
    %14 = math.rsqrt %13 : vector<8x1xf32>
    %15 = vector.broadcast %14 : vector<8x1xf32> to vector<8x16xf32>
    %16 = arith.mulf %6, %15 : vector<8x16xf32>
    %c0_5 = arith.constant 0 : index
    %c0_6 = arith.constant 0 : index
    %17 = vector.load %arg2[%c0_5, %c0_6] : memref<1x16xf32, #tpu.memory_space<vmem>>, vector<1x16xf32>
    %18 = vector.broadcast %17 : vector<1x16xf32> to vector<8x16xf32>
    %19 = arith.mulf %16, %18 : vector<8x16xf32>
    %c0_7 = arith.constant 0 : index
    %c0_8 = arith.constant 0 : index
    %20 = vector.load %arg3[%c0_7, %c0_8] : memref<1x16xf32, #tpu.memory_space<vmem>>, vector<1x16xf32>
    %21 = vector.broadcast %20 : vector<1x16xf32> to vector<8x16xf32>
    %22 = arith.addf %19, %21 : vector<8x16xf32>
    %c0_9 = arith.constant 0 : index
    %c0_10 = arith.constant 0 : index
    %23 = vector.load %arg4[%c0_9, %c0_10] : memref<16x256xf32, #tpu.memory_space<vmem>>, vector<16x256xf32>
    %cst_11 = arith.constant dense<0.000000e+00> : vector<8x256xf32>
    %24 = tpu.matmul %22, %23, %cst_11 {dimension_numbers = #tpu.dot_dimension_numbers<[1], [0], [0], [1], [0, 0, 1, 1], [], []>} : vector<8x16xf32>, vector<16x256xf32>, vector<8x256xf32> -> vector<8x256xf32>
    %c0_12 = arith.constant 0 : index
    %c0_13 = arith.constant 0 : index
    %25 = vector.load %arg5[%c0_12, %c0_13] : memref<1x256xf32, #tpu.memory_space<vmem>>, vector<1x256xf32>
    %26 = vector.broadcast %25 : vector<1x256xf32> to vector<8x256xf32>
    %27 = arith.addf %24, %26 : vector<8x256xf32>
    %c0_14 = arith.constant 0 : index
    %c0_15 = arith.constant 0 : index
    %28 = vector.load %arg6[%c0_14, %c0_15] : memref<8x256xf32, #tpu.memory_space<vmem>>, vector<8x256xf32>
    tpu.vector_store %arg6[%c0_14, %c0_15], %27 {strides = array<i32>} : memref<8x256xf32, #tpu.memory_space<vmem>>, vector<8x256xf32>,
    return
  }
  func.func @transform_0(%arg0: i32) -> (i32, i32) {
    %c0_i32 = arith.constant 0 : i32
    %c0_i32_0 = arith.constant 0 : i32
    return %arg0, %c0_i32 : i32, i32
  }
  func.func @transform_1(%arg0: i32) -> (i32, i32) {
    %c0_i32 = arith.constant 0 : i32
    %c0_i32_0 = arith.constant 0 : i32
    %c0_i32_1 = arith.constant 0 : i32
    return %c0_i32, %c0_i32_0 : i32, i32
  }
  func.func @transform_2(%arg0: i32) -> (i32, i32) {
    %c0_i32 = arith.constant 0 : i32
    %c0_i32_0 = arith.constant 0 : i32
    %c0_i32_1 = arith.constant 0 : i32
    return %c0_i32, %c0_i32_0 : i32, i32
  }
  func.func @transform_3(%arg0: i32) -> (i32, i32) {
    %c0_i32 = arith.constant 0 : i32
    %c0_i32_0 = arith.constant 0 : i32
    %c0_i32_1 = arith.constant 0 : i32
    return %c0_i32, %c0_i32_0 : i32, i32
  }
  func.func @transform_4(%arg0: i32) -> (i32, i32) {
    %c0_i32 = arith.constant 0 : i32
    %c0_i32_0 = arith.constant 0 : i32
    %c0_i32_1 = arith.constant 0 : i32
    return %c0_i32, %c0_i32_0 : i32, i32
  }
  func.func @transform_5(%arg0: i32) -> (i32, i32) {
    %c0_i32 = arith.constant 0 : i32
    %c0_i32_0 = arith.constant 0 : i32
    return %arg0, %c0_i32 : i32, i32
  }
}

</mosaic_0001>

<bundles_post_ra>
// kernel: tpu_custom_call.1
= control target key start
LH: loop header
LB: loop body
LE: loop exit
PB: predicated region body
PF: predicated region fallthrough
CT: control target
= control target key end

     0   :  { %10 = vsyncpa [#allocation3], 0  ;;  %s1203_s0 = inlined_call_operand.hbm [shape: f32[16,16], index: 0, kind: input, shape index: {}]   ;;  %s1204_s1 = inlined_call_operand.hbm [shape: f32[1,16], index: 1, kind: input, shape index: {}]   ;;  %s1205_s2 = inlined_call_operand.hbm [shape: f32[1,16], index: 2, kind: input, shape index: {}]   ;;  %s1206_s3 = inlined_call_operand.hbm [shape: f32[16,256], index: 3, kind: input, shape index: {}]   ;;  %s1207_s4 = inlined_call_operand.hbm [shape: f32[1,256], index: 4, kind: input, shape index: {}]   ;;  %s1208_s5 = inlined_call_operand.hbm [shape: f32[16,256], index: 5, kind: output, shape index: {}]  }
   0x1   :  { %12 = vsyncpa [#allocation3 + $0x1], 0 }
   0x2   :  { %13 = vsyncpa [#allocation6], 0 }
   0x3   :  { %14 = vsyncpa [#allocation9], 0 }
   0x4   :  { %15 = vsyncpa [#allocation4], 0 }
   0x5   :  { %17 = vsyncpa [#allocation4 + $0x1], 0  ;;  %s917_s18 = smov 0   ;;  %s919_s19 = smov 0  }
   0x6   :  { %s921_s20 = smov 0   ;;  %s923_s21 = smov 0  }
   0x7 LB: > { %s878_s22 = smov [#allocation5]   ;;  %s938_s24 = sadd.s32 4294967295, %s876_s21   ;;  %s876_s21 = sphi %s923_s21, %s1232_s21   ;;  %s872_s20 = sphi %s921_s20, %s1231_s20   ;;  %s868_s19 = sphi %s919_s19, %s1230_s19   ;;  %s864_s18 = sphi %s917_s18, %s1229_s18  }
   0x8   : > { %s177_s23 = sshll.u32 %s878_s22, 4  ;;  %p540_p0 = scmp.ge.s32.totalorder %s876_s21, 1  ;;  %s943_s23 = int_to_ptr.vmem [resolvable:$true] %s177_s23 }
   0x9   : > { %p1209_p1 = scmp.eq.s32.totalorder %s938_s24, 0  ;;  %p164_p2 = scmp.lt.s32.totalorder %s876_s21, 3 }
   0xa   : > { %s879_s26 = smov [#allocation8]   ;;  %s880_s29 = smov [#allocation7]  }
   0xb   : > { %p945_p3 = pnand %p540_p0, %p164_p2  ;;  %s198_s27 = sshll.u32 %s879_s26, 4  ;;  %s952_s27 = int_to_ptr.vmem [resolvable:$true] %s198_s27 }
   0xc   : > { %s188_s30 = sshll.u32 %s880_s29, 4  ;;  %s660_s8 = scalar_lea.hbm %s1204_s1, 16  ;;  %s960_s30 = int_to_ptr.vmem [resolvable:$true] %s188_s30 }
   0xd   : > { %s1212_s25 = scalar_select %p945_p3, 1, 0 }
   0xe   : > { %p588_p5 = pneg %p945_p3  ;;  %p661_p7 = scmp.ne.s32.totalorder %s1204_s1, %s660_s8 }
   0xf   : > { %p667_p11 = scmp.lt.u32.totalorder %s660_s8, %s1204_s1 }
  0x10   : > { %p956_p6 = pnand %p588_p5, %p1209_p1 }
  0x12   : > { %p970_p8 = pneg %p956_p6 }
  0x14   : > { %p663_p9 = pnand %p970_p8, %p661_p7 }
  0x16   : > { %p664_p10 = pneg %p663_p9 }
  0x18   : > { %p669_p12 = pnand %p667_p11, %p664_p10 }
  0x1a   : > { %672 = shalt.err (!%p669_p12)
}
  0x1b   : > { %s673_s14 = scalar_lea.vmem %s943_s23, 16  ;;  %s680_s15 = scalar_lea.vmem %s943_s23, 32 }
  0x1c   : > { %p674_p13 = scmp.ne.s32.totalorder %s943_s23, %s673_s14  ;;  %p681_p5 = scmp.lt.s32.totalorder %s943_s23, %s943_s23 }
  0x1d   : > { %p682_p7 = scmp.lt.s32.totalorder %s680_s15, %s673_s14 }
  0x1e   : > { %p676_p0 = pnand %p674_p13, %p970_p8 }
  0x1f   : > { %p683_p9 = por %p682_p7, %p681_p5 }
  0x20   : > { %p677_p2 = pneg %p676_p0 }
  0x22   : > { %p684_p4 = pnand %p683_p9, %p677_p2 }
  0x24   : > { %687 = shalt.err (!%p684_p4)
}
  0x25   : > { %591 = dma.hbm_to_vmem [thread:$0]  (!%p956_p6), %s1204_s1, 16, %s943_s23, [#allocation6]  }
  0x26   : > { %s688_s29 = scalar_lea.hbm %s1206_s3, 512 }
  0x27   : > { %p689_p10 = scmp.ne.s32.totalorder %s1206_s3, %s688_s29  ;;  %p695_p4 = scmp.lt.u32.totalorder %s688_s29, %s1206_s3 }
  0x29   : > { %p691_p11 = pnand %p689_p10, %p970_p8 }
  0x2b   : > { %p692_p12 = pneg %p691_p11 }
  0x2d   : > { %p697_p13 = pnand %p695_p4, %p692_p12 }
  0x2f   : > { %700 = shalt.err (!%p697_p13)
}
  0x30   : > { %s701_s23 = scalar_lea.vmem %s952_s27, 512  ;;  %p709_p7 = scmp.lt.s32.totalorder %s952_s27, %s952_s27 }
  0x31   : > { %p702_p0 = scmp.ne.s32.totalorder %s952_s27, %s701_s23  ;;  %p710_p9 = scmp.lt.s32.totalorder %s701_s23, %s701_s23 }
  0x33   : > { %p704_p2 = pnand %p702_p0, %p970_p8  ;;  %p711_p10 = por %p710_p9, %p709_p7 }
  0x35   : > { %p705_p5 = pneg %p704_p2 }
  0x37   : > { %p712_p11 = pnand %p711_p10, %p705_p5 }
  0x39   : > { %715 = shalt.err (!%p712_p11)
}
  0x3a   : > { %s881_s10 = smov 256   ;;  %s882_s12 = smov 16  }
  0x3b   : > { %597 = dma.hbm_to_vmem [thread:$0]  (!%p956_p6), %s1206_s3, 512, %s952_s27, [#allocation9], %s881_s10, %s881_s10, %s882_s12  }
  0x3c   : > { %s716_s17 = scalar_lea.hbm %s1205_s2, 16 }
  0x3d   : > { %p717_p12 = scmp.ne.s32.totalorder %s1205_s2, %s716_s17  ;;  %p723_p0 = scmp.lt.u32.totalorder %s716_s17, %s1205_s2 }
  0x3f   : > { %p719_p4 = pnand %p717_p12, %p970_p8 }
  0x41   : > { %p720_p13 = pneg %p719_p4 }
  0x43   : > { %p725_p2 = pnand %p723_p0, %p720_p13 }
  0x45   : > { %728 = shalt.err (!%p725_p2)
}
  0x46   : > { %s729_s27 = scalar_lea.vmem %s960_s30, 16  ;;  %s736_s7 = scalar_lea.vmem %s960_s30, 32 }
  0x47   : > { %p730_p5 = scmp.ne.s32.totalorder %s960_s30, %s729_s27  ;;  %p737_p10 = scmp.lt.s32.totalorder %s960_s30, %s960_s30 }
  0x48   : > { %p738_p11 = scmp.lt.s32.totalorder %s736_s7, %s729_s27 }
  0x49   : > { %p732_p7 = pnand %p730_p5, %p970_p8 }
  0x4a   : > { %p739_p12 = por %p738_p11, %p737_p10 }
  0x4b   : > { %p733_p9 = pneg %p732_p7 }
  0x4d   : > { %p740_p4 = pnand %p739_p12, %p733_p9 }
  0x4f   : > { %743 = shalt.err (!%p740_p4)
}
  0x50   : > { %594 = dma.hbm_to_vmem [thread:$0]  (!%p956_p6), %s1205_s2, 16, %s960_s30, [#allocation6]  }
  0x51   : > { %s883_s23 = smov [#allocation10]   ;;  %s744_s14 = scalar_lea.hbm %s1207_s4, 32 }
  0x52   : > { %s212_s10 = sshll.u32 %s883_s23, 4  ;;  %p745_p13 = scmp.ne.s32.totalorder %s1207_s4, %s744_s14  ;;  %s213_s10 = int_to_ptr.vmem [resolvable:$true] %s212_s10 }
  0x53   : > { %p751_p5 = scmp.lt.u32.totalorder %s744_s14, %s1207_s4 }
  0x54   : > { %p747_p0 = pnand %p745_p13, %p970_p8 }
  0x56   : > { %p748_p2 = pneg %p747_p0 }
  0x58   : > { %p753_p7 = pnand %p751_p5, %p748_p2 }
  0x5a   : > { %756 = shalt.err (!%p753_p7)
}
  0x5b   : > { %s757_s30 = scalar_lea.vmem %s213_s10, 32  ;;  %p765_p12 = scmp.lt.s32.totalorder %s213_s10, %s213_s10 }
  0x5c   : > { %p758_p9 = scmp.ne.s32.totalorder %s213_s10, %s757_s30  ;;  %p766_p4 = scmp.lt.s32.totalorder %s757_s30, %s757_s30 }
  0x5e   : > { %p760_p10 = pnand %p758_p9, %p970_p8  ;;  %p767_p1 = por %p766_p4, %p765_p12 }
  0x60   : > { %p761_p11 = pneg %p760_p10 }
  0x62   : > { %p768_p3 = pnand %p767_p1, %p761_p11 }
  0x64   : > { %771 = shalt.err (!%p768_p3)
}
  0x65   : > { %600 = dma.hbm_to_vmem [thread:$0]  (!%p956_p6), %s1207_s4, 32, %s213_s10, [#allocation9]  }
  0x66   : > { %s539_s11 = sadd.s32 4294967294, %s876_s21   ;;  %s1059_s28 = sadd.s32 1, %s876_s21  }
  0x67   : > { %s27_s6 = ssub.s32 %s876_s21, %s1059_s28  ;;  %s30_s27 = sadd.s32 1, %s872_s20 }
  0x68   : > { %p28_p1 = scmp.eq.s32.totalorder %s27_s6, 0  ;;  %p37_p3 = scmp.ne.s32.totalorder %s872_s20, %s868_s19 }
  0x69   : > { %p38_p8 = scmp.eq.s32.totalorder %s876_s21, 0  ;;  %p43_p13 = scmp.ne.s32.totalorder %s868_s19, %s864_s18 }
  0x6a   : > { %s1070_s7 = scalar_select %p28_p1, %s872_s20, %s30_s27  }
  0x6b   : > { %p1072_p0 = por %p38_p8, %p37_p3  ;;  %p1216_p2 = scmp.eq.s32.totalorder %s938_s24, 0 }
  0x6c   : > { %p151_p5 = scmp.eq.s32.totalorder %s938_s24, 1  ;;  %p157_p7 = scmp.eq.s32.totalorder %s539_s11, 1 }
  0x6d   : > { %p1078_p6 = por %p1216_p2, %p43_p13  ;;  %p613_p9 = scmp.lt.s32.totalorder %s876_s21, 2 }
  0x6e   : > { %s223_s23 = sand.u32 1, %s872_s20   ;;  %p1085_p10 = por %p151_p5, %p37_p3 }
  0x6f   : > { %p1089_p11 = por %p157_p7, %p43_p13  ;;  %s546_s13 = sshll.u32 %s223_s23, 3 }
  0x70   : > { %s1218_s10 = scalar_select %p1085_p10, 1, 0 }
  0x71   : > { %s1219_s12 = scalar_select %p1089_p11, 1, 0 }
  0x72   : > { %s547_s14 = sshll.u32 %s876_s21, 7  ;;  %s227_s22 = scalar_lea.vmem [#allocation2], %s546_s13 }
  0x73   : > { %s1097_s17 = scalar_lea.hbm %s1203_s0, %s547_s14  ;;  %s234_s30 = sshll.u32 %s227_s22, 4  ;;  %s1099_s30 = int_to_ptr.vmem [resolvable:$true] %s234_s30 }
  0x74   : > { %p1103_p12 = pnand %p613_p9, %p1072_p0  ;;  %s224_s29 = scalar_lea.sflag [#allocation3], %s223_s23 }
  0x75   : > { %s772_s11 = scalar_lea.hbm %s1097_s17, 128  ;;  %s777_s13 = scalar_lea.hbm %s1203_s0, 256 }
  0x76   : > { %p773_p4 = scmp.ne.s32.totalorder %s1097_s17, %s772_s11  ;;  %p774_p1 = pneg %p1103_p12 }
  0x77   : > { %p778_p13 = scmp.lt.u32.totalorder %s1097_s17, %s1203_s0  ;;  %p779_p0 = scmp.lt.u32.totalorder %s777_s13, %s772_s11 }
  0x78   : > { %p775_p3 = pnand %p774_p1, %p773_p4  ;;  %p781_p5 = scmp.lt.u32.totalorder %s772_s11, %s1097_s17 }
  0x79   : > { %p780_p2 = por %p779_p0, %p778_p13 }
  0x7a   : > { %p776_p8 = pneg %p775_p3 }
  0x7b   : > { %p782_p7 = por %p781_p5, %p780_p2 }
  0x7d   : > { %p783_p9 = pnand %p782_p7, %p776_p8 }
  0x7f   : > { %786 = shalt.err (!%p783_p9)
}
  0x80   : > { %s787_s23 = scalar_lea.vmem %s1099_s30, 128  ;;  %s884_s15 = smov [#allocation2]  }
  0x81   : > { %p788_p4 = scmp.ne.s32.totalorder %s1099_s30, %s787_s23  ;;  %s792_s16 = sshll.u32 %s884_s15, 4  ;;  %s793_s16 = int_to_ptr.vmem [resolvable:$false] %s792_s16 }
  0x82   : > { %s794_s22 = scalar_lea.vmem %s793_s16, 256  ;;  %p795_p10 = scmp.lt.s32.totalorder %s1099_s30, %s793_s16 }
  0x83   : > { %p790_p3 = pnand %p788_p4, %p774_p1  ;;  %p796_p13 = scmp.lt.s32.totalorder %s794_s22, %s787_s23 }
  0x85   : > { %p791_p11 = pneg %p790_p3  ;;  %p797_p0 = por %p796_p13, %p795_p10 }
  0x87   : > { %p798_p2 = pnand %p797_p0, %p791_p11 }
  0x89   : > { %801 = shalt.err (!%p798_p2)
}
  0x8a   : > { %604 = dma.hbm_to_vmem [thread:$0]  (!%p1103_p12), %s1097_s17, 128, %s1099_s30, %s224_s29  }
  0x8b   : > { %p1221_p8 = scmp.ne.s32.totalorder %s1212_s25, 0 }
  0x8c   : > { %s1135_s11 = sand.u32 (!%p1221_p8), 1, %s868_s19  }
  0x8d   : > { %243 = sbr.rel (%p1221_p8) target bundleno = 698 (0x2ba), region = 40  ;;  %s549_s6 = sshll.u32 (!%p1221_p8), %s1135_s11, 3 }
  0x8e   : > { %s246_s27 = scalar_lea.sflag (!%p1221_p8), [#allocation3], %s1135_s11  ;;  %s249_s13 = scalar_lea.vmem (!%p1221_p8), [#allocation2], %s549_s6 }
  0x94   : > { %847 = dma.done.wait (%p1078_p6), %s246_s27, 128  }
  0x95   : > { %849 = vsyncadd (%p1078_p6), %s246_s27, 4294967168  ;;  %p1222_p10 = scmp.eq.s32.totalorder %s938_s24, 0 }
  0x97   : > { %851 = dma.done.wait (%p1222_p10), [#allocation6], 32   ;;  %p1223_p11 = pmov %p1222_p10 }
  0x98   : > { %p1224_p12 = pmov %p1222_p10 }
  0x99   : > { %853 = vsyncadd (%p1223_p11), [#allocation6], 4294967264 }
  0x9a   : > { %855 = dma.done.wait (%p1224_p12), [#allocation9], 544   ;;  %p1225_p1 = pmov %p1222_p10 }
  0x9b   : > { %vm293_vm0 = vcmask 130048   ;;  %v292_v0 = vld [vmem:[%s249_s13] sm:$0xff]  ;;  %v324_v9 = vld [vmem:[#allocation8] sm:$0xff]  ;;  %v885_v12 = vmov 0.0   ;;  %v555_v18 = vld [vmem:[#allocation5] ss:$0 sm:$0xff]  ;;  %v330_v23 = vlaneseq }
  0x9c   : > { %857 = vsyncadd (%p1225_p1), [#allocation9], 4294966752  ;;  %v294_v1 = vsel %vm293_vm0, %v292_v0, 0.0  ;;  %v325_v7 = vld [vmem:[#allocation8 + $0x8] sm:$0xff]  ;;  %v327_v8 = vld [vmem:[#allocation8 + $0x18] sm:$0xff]  ;;  %407 = vmatprep.mubr.f32.mxu0 %v885_v12  ;;  %s554_s25 = sshll.u32 %s1135_s11, 4 }
  0x9d   : > { %295 = vadd.xlane.f32.xlu0 %v294_v1  ;;  %v564_v10 = vpack.c.bf16 %v327_v8, %v325_v7  ;;  %v326_v11 = vld [vmem:[#allocation8 + $0x10] sm:$0xff]  ;;  %v556_v20 = vld [vmem:[#allocation7] ss:$0 sm:$0xff]  ;;  %v331_v24 = vshrl.u32 %v330_v23, 7  ;;  %v328_v26 = vld [vmem:[#allocation10] sm:$0x3] }
  0x9e   : > { %v566_v13 = vpack.c.bf16 %v326_v11, %v324_v9  ;;  %s563_s9 = sshll.u32 %s938_s24, 8  ;;  %s291_s17 = scalar_lea.vmem [#allocation11], %s554_s25 }
  0x9f   : > { %565 = vmatprep.subr.bf16.mxu0 %v564_v10  ;;  %v332_v25 = vsub.s32 0, %v331_v24  ;;  %v336_v27 = vsub.s32 1, %v331_v24  ;;  %s431_s30 = sshll.u32 %s291_s17, 4  ;;  %s1159_s8 = scalar_lea.hbm %s1208_s5, %s563_s9  ;;  %s1161_s30 = int_to_ptr.vmem [resolvable:$true] %s431_s30 }
  0xa0   : > { %567 = vmatpush1.bf16.msra.mxu0 %v566_v13  ;;  %s417_s14 = scalar_lea.sflag [#allocation4], %s1135_s11  ;;  %s802_s24 = scalar_lea.vmem %s1161_s30, 256 }
  0xa1   : > { %v333_v28 = vrot.slane %v328_v26, %v332_v25  ;;  %v337_v29 = vrot.slane %v328_v26, %v336_v27  ;;  %p803_p6 = scmp.ne.s32.totalorder %s1161_s30, %s802_s24  ;;  %p1226_p5 = scmp.ne.s32.totalorder %s1218_s10, 0 }
  0xa2   : > { %s886_s23 = smov [#allocation11]  }
  0xa3   : > { %p804_p7 = pnand %p803_p6, %p1226_p5  ;;  %s806_s15 = sshll.u32 %s886_s23, 4  ;;  %s807_s15 = int_to_ptr.vmem [resolvable:$false] %s806_s15 }
  0xa4   : > { %s808_s16 = scalar_lea.vmem %s807_s15, 512  ;;  %p809_p4 = scmp.lt.s32.totalorder %s1161_s30, %s807_s15 }
  0xa5   : > { %p805_p9 = pneg %p804_p7  ;;  %p810_p3 = scmp.lt.s32.totalorder %s808_s16, %s802_s24 }
  0xa7   : > { %p811_p13 = por %p810_p3, %p809_p4 }
  0xa9   : > { %p812_p0 = pnand %p811_p13, %p805_p9 }
 0x12a   : > { %v296_v2 = vpop.xlane.xlu0 %295 }
 0x12b   : > { %v298_v3 = vmul.f32 0.0625, %v296_v2 }
 0x12d   : > { %v299_v4 = vsub.f32 %v292_v0, %v298_v3 }
 0x12f   : > { %v300_v5 = vmul.f32 %v299_v4, %v299_v4 }
 0x131   : > { %v301_v6 = vsel %vm293_vm0, %v300_v5, 0.0 }
 0x132   : > { %302 = vadd.xlane.f32.xlu0 %v301_v6 }
 0x1bf   : > { %v303_v14 = vpop.xlane.xlu0 %302 }
 0x1c0   : > { %v304_v15 = vmul.f32 0.0625, %v303_v14 }
 0x1c2   : > { %v305_v16 = vadd.f32 1e-05, %v304_v15 }
 0x1c4   : > { %658 = vrsqrt.f32 %v305_v16 }
 0x1ce   : > { %v659_v17 = vpop.eup %658 }
 0x1cf   : > { %v307_v19 = vmul.f32 %v659_v17, %v299_v4 }
 0x1d1   : > { %v315_v21 = vmul.f32 %v555_v18, %v307_v19 }
 0x1d3   : > { %v323_v22 = vadd.f32 %v556_v20, %v315_v21 }
 0x1d5   : > { %557 = vmatmul.mubr.msk.f32.vlgmr.msra.gmra.mrb[0].mxu0 %vm293_vm0, %v323_v22 }
 0x2a8   : > { %v409_v30 = vpop.f32.mrb[0].mxu0 }
 0x2a9   : > { %v410_v31 = vadd.f32 %v409_v30, %v333_v28  ;;  %v411_v32 = vpop.f32.mrb[1].mxu0 }
 0x2aa   : > { %v412_v33 = vadd.f32 %v411_v32, %v337_v29 }
 0x2ab   : > { %414 = vst [vmem:[%s291_s17] sm:$0xff] %v410_v31 }
 0x2ac   : > { %415 = vst [vmem:[%s291_s17 + $0x8] sm:$0xff] %v412_v33 }
 0x2ad   : > { %815 = shalt.err (!%p812_p0)
}
 0x2ae   : > { %s816_s22 = scalar_lea.hbm %s1159_s8, 256  ;;  %s820_s27 = scalar_lea.hbm %s1208_s5, 512 }
 0x2af   : > { %p817_p2 = scmp.ne.s32.totalorder %s1159_s8, %s816_s22  ;;  %p821_p11 = scmp.lt.u32.totalorder %s1159_s8, %s1208_s5 }
 0x2b0   : > { %p822_p12 = scmp.lt.u32.totalorder %s820_s27, %s816_s22  ;;  %p824_p6 = scmp.lt.u32.totalorder %s816_s22, %s1159_s8 }
 0x2b1   : > { %p818_p8 = pnand %p817_p2, %p1226_p5 }
 0x2b2   : > { %p823_p1 = por %p822_p12, %p821_p11 }
 0x2b3   : > { %p819_p10 = pneg %p818_p8 }
 0x2b4   : > { %p825_p7 = por %p824_p6, %p823_p1 }
 0x2b6   : > { %p826_p9 = pnand %p825_p7, %p819_p10 }
 0x2b8   : > { %829 = shalt.err (!%p826_p9)
}
 0x2b9   : > { %586 = dma.vmem_to_hbm [thread:$0]  (%p1226_p5), %s1161_s30, 256, %s1159_s8, %s417_s14  }
 0x2ba PF: > { %s443_s9 = sand.u32 1, %s864_s18   ;;  %p1227_p4 = scmp.ne.s32.totalorder %s1219_s12, 0 }
 0x2bb   : > { %p1228_p3 = scmp.ge.s32.totalorder %s876_s21, 2  ;;  %s444_s17 = scalar_lea.sflag [#allocation4], %s443_s9 }
 0x2bd   : > { %p606_p13 = pnand %p1228_p3, %p1227_p4 }
 0x2bf   : > { %859 = dma.done.wait (!%p606_p13), %s444_s17, 256  }
 0x2c0   : > { %861 = vsyncadd (!%p606_p13), %s444_s17, 4294967040  ;;  %p20_p0 = scmp.ge.s32.totalorder %s1059_s28, 4   ;;  %s1229_s18 = smov %s868_s19 }
 0x2c1   : > { %s1230_s19 = smov %s872_s20  ;;  %s1231_s20 = smov %s1070_s7 }
 0x2c2   : > { %s1232_s21 = smov %s1059_s28  ;;  %22 = sbr.rel (!%p20_p0) target bundleno = 7 (0x7), region = 101 }
 0x2c9   :  { %449 = vsyncpa [#allocation3], 1 }
 0x2ca   :  { %451 = vsyncpa [#allocation3 + $0x1], 1 }
 0x2cb   :  { %452 = vsyncpa [#allocation6], 1 }
 0x2cc   :  { %453 = vsyncpa [#allocation9], 1 }
 0x2cd   :  { %454 = vsyncpa [#allocation4], 1 }
 0x2ce   :  { %456 = vsyncpa [#allocation4 + $0x1], 1 }

</bundles_post_ra>
